<compile_context>
chip_gen: v5e
topology: v5e:2x2
jax: 0.10.0
libtpu: 0.0.40
codegen_flags: <defaults>
</compile_context>

<pallas_src>
import jax
import jax.numpy as jnp
from jax import lax
from jax.experimental import pallas as pl
from jax.experimental.pallas import tpu as pltpu


def stdp_kernel(trace_ref, new_h_ref, r_ref, z_ref, ddu_ref, new_trace_ref):
    # Whole (small) arrays are resident in VMEM; single grid point.
    trace = trace_ref[...].astype(jnp.float32)
    new_h = new_h_ref[...].astype(jnp.float32)

    # ddU = new_h^T @ trace - trace^T @ new_h, contracting the batch dim (0)
    # of both operands directly — two tiny K=B MXU passes, no transposes.
    dims = (((0,), (0,)), ((), ()))
    m1 = lax.dot_general(new_h, trace, dims, preferred_element_type=jnp.float32)
    m2 = lax.dot_general(trace, new_h, dims, preferred_element_type=jnp.float32)
    ddu_ref[...] = (m1 - m2).astype(ddu_ref.dtype)

    # Elementwise trace update on the VPU, fused form, f32 intermediates:
    #   (1 - z)*trace + z*r*new_h  ==  trace + z*(r*new_h - trace)
    r = r_ref[...].astype(jnp.float32)
    z = z_ref[...].astype(jnp.float32)
    new_trace_ref[...] = (trace + z * (r * new_h - trace)).astype(
        new_trace_ref.dtype)


@jax.jit
def stdp_forward(trace, new_h, r, z):
    B, H = trace.shape
    assert new_h.shape == (B, H) and r.shape == (B, H) and z.shape == (B, H)
    dtype = trace.dtype

    vmem = pltpu.MemorySpace.VMEM
    ddu, new_trace = pl.pallas_call(
        stdp_kernel,
        out_shape=(
            jax.ShapeDtypeStruct((H, H), dtype),   # ddU
            jax.ShapeDtypeStruct((B, H), dtype),   # new_trace
        ),
        # Small problem: whole arrays resident in VMEM, one grid point.
        in_specs=[pl.BlockSpec(memory_space=vmem)] * 4,
        out_specs=(pl.BlockSpec(memory_space=vmem),
                   pl.BlockSpec(memory_space=vmem)),
    )(trace, new_h, r, z)
    return ddu, new_trace


def stdp_reference(trace, new_h, r, z):
    ddU = new_h.T @ trace - trace.T @ new_h
    new_trace = (1.0 - z) * trace + z * r * new_h
    return ddU, new_trace


if __name__ == "__main__":
    B, H = 8, 32  # batch=8, hidden_dim=32
    key = jax.random.PRNGKey(0)
    k1, k2, k3, k4 = jax.random.split(key, 4)
    trace = jax.random.normal(k1, (B, H), dtype=jnp.float32)
    new_h = jax.random.normal(k2, (B, H), dtype=jnp.float32)
    r = jax.nn.sigmoid(jax.random.normal(k3, (B, H), dtype=jnp.float32))
    z = jax.nn.sigmoid(jax.random.normal(k4, (B, H), dtype=jnp.float32))

    ddU, new_trace = stdp_forward(trace, new_h, r, z)
    jax.block_until_ready((ddU, new_trace))

    ddU_ref, new_trace_ref = stdp_reference(trace, new_h, r, z)
    assert ddU.shape == (H, H) and new_trace.shape == (B, H)
    assert jnp.allclose(ddU, ddU_ref, atol=1e-5, rtol=1e-5)
    assert jnp.allclose(new_trace, new_trace_ref, atol=1e-5, rtol=1e-5)

    print("KERNEL_OK")
</pallas_src>

<mosaic_0001>
module attributes {stable_mosaic.version = 11 : i64} {
  func.func @stdp_kernel(%arg0: memref<8x32xf32, #tpu.memory_space<vmem>>, %arg1: memref<8x32xf32, #tpu.memory_space<vmem>>, %arg2: memref<8x32xf32, #tpu.memory_space<vmem>>, %arg3: memref<8x32xf32, #tpu.memory_space<vmem>>, %arg4: memref<32x32xf32, #tpu.memory_space<vmem>>, %arg5: memref<8x32xf32, #tpu.memory_space<vmem>>) attributes {dimension_semantics = [], scalar_prefetch = 0 : i64, scratch_operands = 0 : i64, tpu.core_type = #tpu.core_type<tc>} {
    %c0 = arith.constant 0 : index
    %c0_0 = arith.constant 0 : index
    %0 = vector.load %arg0[%c0, %c0_0] : memref<8x32xf32, #tpu.memory_space<vmem>>, vector<8x32xf32>
    %c0_1 = arith.constant 0 : index
    %c0_2 = arith.constant 0 : index
    %1 = vector.load %arg1[%c0_1, %c0_2] : memref<8x32xf32, #tpu.memory_space<vmem>>, vector<8x32xf32>
    %cst = arith.constant dense<0.000000e+00> : vector<32x32xf32>
    %2 = tpu.matmul %1, %0, %cst {dimension_numbers = #tpu.dot_dimension_numbers<[0], [0], [1], [1], [0, 1, 1, 1], [], []>} : vector<8x32xf32>, vector<8x32xf32>, vector<32x32xf32> -> vector<32x32xf32>
    %cst_3 = arith.constant dense<0.000000e+00> : vector<32x32xf32>
    %3 = tpu.matmul %0, %1, %cst_3 {dimension_numbers = #tpu.dot_dimension_numbers<[0], [0], [1], [1], [0, 1, 1, 1], [], []>} : vector<8x32xf32>, vector<8x32xf32>, vector<32x32xf32> -> vector<32x32xf32>
    %4 = arith.subf %2, %3 : vector<32x32xf32>
    %c0_4 = arith.constant 0 : index
    %c0_5 = arith.constant 0 : index
    %5 = vector.load %arg4[%c0_4, %c0_5] : memref<32x32xf32, #tpu.memory_space<vmem>>, vector<32x32xf32>
    tpu.vector_store %arg4[%c0_4, %c0_5], %4 {strides = array<i32>} : memref<32x32xf32, #tpu.memory_space<vmem>>, vector<32x32xf32>,
    %c0_6 = arith.constant 0 : index
    %c0_7 = arith.constant 0 : index
    %6 = vector.load %arg2[%c0_6, %c0_7] : memref<8x32xf32, #tpu.memory_space<vmem>>, vector<8x32xf32>
    %c0_8 = arith.constant 0 : index
    %c0_9 = arith.constant 0 : index
    %7 = vector.load %arg3[%c0_8, %c0_9] : memref<8x32xf32, #tpu.memory_space<vmem>>, vector<8x32xf32>
    %8 = arith.mulf %6, %1 : vector<8x32xf32>
    %9 = arith.subf %8, %0 : vector<8x32xf32>
    %10 = arith.mulf %7, %9 : vector<8x32xf32>
    %11 = arith.addf %0, %10 : vector<8x32xf32>
    %c0_10 = arith.constant 0 : index
    %c0_11 = arith.constant 0 : index
    %12 = vector.load %arg5[%c0_10, %c0_11] : memref<8x32xf32, #tpu.memory_space<vmem>>, vector<8x32xf32>
    tpu.vector_store %arg5[%c0_10, %c0_11], %11 {strides = array<i32>} : memref<8x32xf32, #tpu.memory_space<vmem>>, vector<8x32xf32>,
    return
  }
}

</mosaic_0001>

<bundles_post_ra>
// kernel: stdp_forward.1
= control target key start
LH: loop header
LB: loop body
LE: loop exit
PB: predicated region body
PF: predicated region fallthrough
CT: control target
= control target key end

     0   :  { %11 = vsyncpa [#allocation3], 0  ;;  %s520_s0 = inlined_call_operand.hbm [shape: f32[8,32], index: 0, kind: input, shape index: {}]   ;;  %s521_s1 = inlined_call_operand.hbm [shape: f32[8,32], index: 1, kind: input, shape index: {}]   ;;  %s522_s2 = inlined_call_operand.hbm [shape: f32[8,32], index: 2, kind: input, shape index: {}]   ;;  %s523_s3 = inlined_call_operand.hbm [shape: f32[8,32], index: 3, kind: input, shape index: {}]   ;;  %s524_s4 = inlined_call_operand.hbm [shape: f32[32,32], index: 4, kind: output, shape index: {0}]   ;;  %s525_s5 = inlined_call_operand.hbm [shape: f32[8,32], index: 5, kind: output, shape index: {1}]  }
   0x1   :  { %12 = vsyncpa [#allocation6], 0 }
   0x2   :  { %13 = vsyncpa [#allocation9], 0 }
   0x3   :  { %14 = vsyncpa [#allocation4], 0  ;;  %s32_s20 = sshll.u32 %s521_s1, 4  ;;  %s33_s20 = int_to_ptr.hbm [resolvable:$true] %s32_s20 }
   0x4   :  { %15 = vsyncpa [#allocation12], 0  ;;  %s451_s21 = smov [#allocation5]   ;;  %s21_s25 = sshll.u32 %s520_s0, 4  ;;  %s22_s25 = int_to_ptr.hbm [resolvable:$true] %s21_s25 }
   0x5   :  { %s34_s22 = sshll.u32 %s451_s21, 4  ;;  %s452_s26 = smov [#allocation2]   ;;  %s35_s22 = int_to_ptr.vmem [resolvable:$true] %s34_s22 }
   0x6   :  { %37 = dma.hbm_to_vmem [thread:$0]  %s33_s20, 128, %s35_s22, [#allocation6]  }
   0x7   :  { %s23_s27 = sshll.u32 %s452_s26, 4  ;;  %s43_s30 = sshll.u32 %s522_s2, 4  ;;  %s24_s27 = int_to_ptr.vmem [resolvable:$true] %s23_s27  ;;  %s44_s30 = int_to_ptr.hbm [resolvable:$true] %s43_s30 }
   0x8   :  { %26 = dma.hbm_to_vmem [thread:$0]  %s22_s25, 128, %s24_s27, [#allocation3]  }
   0x9   :  { %s54_s7 = sshll.u32 %s523_s3, 4  ;;  %s453_s8 = smov [#allocation7]   ;;  %s55_s7 = int_to_ptr.hbm [resolvable:$true] %s54_s7 }
   0xa   :  { %s45_s9 = sshll.u32 %s453_s8, 4  ;;  %s454_s0 = smov [#allocation8]   ;;  %s46_s9 = int_to_ptr.vmem [resolvable:$true] %s45_s9 }
   0xb   :  { %48 = dma.hbm_to_vmem [thread:$0]  %s44_s30, 128, %s46_s9, [#allocation6]  }
   0xc   :  { %s56_s10 = sshll.u32 %s454_s0, 4  ;;  %s57_s10 = int_to_ptr.vmem [resolvable:$true] %s56_s10 }
   0xd   :  { %59 = dma.hbm_to_vmem [thread:$0]  %s55_s7, 128, %s57_s10, [#allocation9]  }
   0xe   :  { %441 = dma.done.wait [#allocation3], 128  }
   0xf   :  { %442 = vsyncadd [#allocation3], 4294967168 }
  0x10   :  { %443 = dma.done.wait [#allocation6], 256  }
  0x11   :  { %444 = vsyncadd [#allocation6], 4294967040 }
  0x12   :  { %445 = dma.done.wait [#allocation9], 128  }
  0x13   :  { %446 = vsyncadd [#allocation9], 4294967168  ;;  %v77_v0 = vld [vmem:[#allocation5] sm:$0xff]  ;;  %v76_v1 = vld [vmem:[#allocation2] sm:$0xff]  ;;  %vm110_vm0 = vcmask 64512   ;;  %s455_s2 = smov [#allocation11]  }
  0x14   :  { %78 = vxpose.xlu0.b32.start.end [1/1] (short) (narrow) %v77_v0, 32  ;;  %138 = vmatpush.msra.mxu0 %v76_v1  ;;  %v234_v10 = vld [vmem:[#allocation7] sm:$0xff]  ;;  %v235_v13 = vld [vmem:[#allocation8] sm:$0xff]  ;;  %s259_s3 = sshll.u32 %s455_s2, 4  ;;  %s261_s13 = sshll.u32 %s525_s5, 4  ;;  %vm229_vm1 = vcmask 261120   ;;  %s260_s3 = int_to_ptr.vmem [resolvable:$true] %s259_s3  ;;  %s262_s13 = int_to_ptr.hbm [resolvable:$true] %s261_s13 }
  0x15   :  { %286 = vmatpush.msra.mxu2 %v76_v1  ;;  %211 = vmatpush.msra.mxu1 %v77_v0  ;;  %v236_v11 = vmul.f32 %v234_v10, %v77_v0  ;;  %s456_s5 = smov [#allocation10]   ;;  %s247_s17 = sshll.u32 %s524_s4, 4  ;;  %s248_s17 = int_to_ptr.hbm [resolvable:$true] %s247_s17 }
  0x16   :  { %287 = vmatpush.msra.mxu3 %v77_v0  ;;  %s245_s14 = sshll.u32 %s456_s5, 4  ;;  %s457_s18 = smov 128   ;;  %s246_s14 = int_to_ptr.vmem [resolvable:$true] %s245_s14 }
  0x17   :  { %v237_v12 = vsub.f32 %v236_v11, %v76_v1  ;;  %s458_s19 = smov 8  }
  0x19   :  { %v238_v14 = vmul.f32 %v237_v12, %v235_v13 }
  0x1b   :  { %v239_v16 = vadd.f32 %v238_v14, %v76_v1 }
  0x1d   :  { %240 = vst.msk [vmem:[#allocation11] sm:$0xff] %vm229_vm1, %v239_v16 }
  0x1e   :  { %264 = dma.vmem_to_hbm [thread:$0]  %s260_s3, 128, %s262_s13, [#allocation12]  }
  0x34   :  { %152 = vxpose.xlu0.b32.start.end [1/1] (short) (narrow) %v76_v1, 32 }
  0xb8   :  { %v94_v2 = vpop.trf.xlu0 }
  0xb9   :  { %278 = vmatmul.msk.f32.vlgmr.msra.gmra.mxu0 %vm110_vm0, %v94_v2 }
  0xc0   :  { %v95_v3 = vpop.trf.xlu0 }
  0xc1   :  { %279 = vmatmul.msk.f32.gmra.mxu0 %vm110_vm0, %v95_v3 }
  0xc8   :  { %v96_v4 = vpop.trf.xlu0 }
  0xc9   :  { %280 = vmatmul.msk.f32.vlgmr.msra.gmra.mxu2 %vm110_vm0, %v96_v4 }
  0xd0   :  { %v97_v5 = vpop.trf.xlu0 }
  0xd1   :  { %281 = vmatmul.msk.f32.gmra.mxu2 %vm110_vm0, %v97_v5 }
  0xd8   :  { %v168_v6 = vpop.trf.xlu0 }
  0xd9   :  { %282 = vmatmul.msk.f32.vlgmr.msra.gmra.mxu1 %vm110_vm0, %v168_v6 }
  0xe0   :  { %v169_v7 = vpop.trf.xlu0 }
  0xe1   :  { %283 = vmatmul.msk.f32.gmra.mxu1 %vm110_vm0, %v169_v7 }
  0xe8   :  { %v170_v8 = vpop.trf.xlu0 }
  0xe9   :  { %284 = vmatmul.msk.f32.vlgmr.msra.gmra.mxu3 %vm110_vm0, %v170_v8 }
  0xf0   :  { %v171_v9 = vpop.trf.xlu0 }
  0xf1   :  { %285 = vmatmul.msk.f32.gmra.mxu3 %vm110_vm0, %v171_v9 }
 0x136   :  { %v140_v15 = vpop.f32.mrf.mxu0 }
 0x13e   :  { %v143_v19 = vpop.f32.mrf.mxu0 }
 0x14c   :  { %v146_v22 = vpop.f32.mrf.mxu2 }
 0x154   :  { %v149_v25 = vpop.f32.mrf.mxu2 }
 0x156   :  { %v213_v17 = vpop.f32.mrf.mxu1 }
 0x157   :  { %v225_v18 = vsub.f32 %v140_v15, %v213_v17 }
 0x159   :  { %230 = vst.msk [vmem:[#allocation10] sm:$0xff] %vm229_vm1, %v225_v18 }
 0x15e   :  { %v216_v20 = vpop.f32.mrf.mxu1 }
 0x15f   :  { %v226_v21 = vsub.f32 %v143_v19, %v216_v20 }
 0x161   :  { %231 = vst.msk [vmem:[#allocation10 + $0x8] sm:$0xff] %vm229_vm1, %v226_v21 }
 0x16c   :  { %v219_v23 = vpop.f32.mrf.mxu3 }
 0x16d   :  { %v227_v24 = vsub.f32 %v146_v22, %v219_v23 }
 0x16f   :  { %232 = vst.msk [vmem:[#allocation10 + $0x10] sm:$0xff] %vm229_vm1, %v227_v24 }
 0x174   :  { %v222_v26 = vpop.f32.mrf.mxu3 }
 0x175   :  { %v228_v27 = vsub.f32 %v149_v25, %v222_v26 }
 0x177   :  { %233 = vst.msk [vmem:[#allocation10 + $0x18] sm:$0xff] %vm229_vm1, %v228_v27 }
 0x178   :  { %253 = dma.vmem_to_hbm [thread:$0]  %s246_s14, 512, %s248_s17, [#allocation4], %s457_s18, %s457_s18, %s458_s19  }
 0x179   :  { %447 = dma.done.wait [#allocation4], 512  }
 0x17a   :  { %448 = vsyncadd [#allocation4], 4294966784 }
 0x17b   :  { %449 = dma.done.wait [#allocation12], 128  }
 0x17c   :  { %450 = vsyncadd [#allocation12], 4294967168 }
 0x17d   :  { %273 = vsyncpa [#allocation3], 1 }
 0x17e   :  { %274 = vsyncpa [#allocation6], 1 }
 0x17f   :  { %275 = vsyncpa [#allocation9], 1 }
 0x180   :  { %276 = vsyncpa [#allocation4], 1 }
 0x181   :  { %277 = vsyncpa [#allocation12], 1 }

</bundles_post_ra>
